<compile_context>
chip_gen: v7x
topology: tpu7x:2x2x1
jax: 0.10.0
libtpu: 0.0.40
codegen_flags: <defaults>
</compile_context>

<pallas_src>
import functools

import jax
import jax.numpy as jnp
from jax.experimental import pallas as pl
from jax.experimental.pallas import tpu as pltpu


# Padded (lane-aligned) layer widths.
IN_P, H1_P, H2_P, H3_P, OUT_P = 128, 256, 512, 256, 128


def _round_up(n, m):
    return ((n + m - 1) // m) * m


def _pad2(a, rows, cols):
    return jnp.pad(a, ((0, rows - a.shape[0]), (0, cols - a.shape[1])))


def _mlp_kernel(x_ref,
                w1_ref, b1_ref,
                w2_ref, b2_ref,
                w3_ref, b3_ref,
                w4_ref, b4_ref,
                o_ref):
    """One (TB, IN_P) batch tile through all 4 layers. Weights stay resident."""
    mm_dtype = w1_ref.dtype  # f32 or bf16; accumulation is always f32.

    # fc1 + relu
    h = jnp.dot(x_ref[...], w1_ref[...], preferred_element_type=jnp.float32)
    h = jnp.maximum(h + b1_ref[...], 0.0)
    # fc2 + relu
    h = jnp.dot(h.astype(mm_dtype), w2_ref[...],
                preferred_element_type=jnp.float32)
    h = jnp.maximum(h + b2_ref[...], 0.0)
    # fc3 + relu
    h = jnp.dot(h.astype(mm_dtype), w3_ref[...],
                preferred_element_type=jnp.float32)
    h = jnp.maximum(h + b3_ref[...], 0.0)
    # fc4 + sigmoid
    h = jnp.dot(h.astype(mm_dtype), w4_ref[...],
                preferred_element_type=jnp.float32)
    h = h + b4_ref[...]
    # sigmoid = 1 / (1 + exp(-h)); exp -> EUP, reciprocal -> EUP vrcp (approx).
    o_ref[...] = pl.reciprocal(1.0 + jnp.exp(-h), approx=True).astype(o_ref.dtype)


@functools.partial(jax.jit, static_argnames=("tb", "use_bf16"))
def mlp_forward(x, params, *, tb=256, use_bf16=False):
    """x: (B, 100) float32.  params: W1..W4 stored as (in, out), b1..b4 (1, out).

    Equivalent to PyTorch's fc(x) = x @ W.T + b per layer, with ReLU between
    layers and a final sigmoid.
    """
    B, fin = x.shape
    assert fin == 100

    mm_dtype = jnp.bfloat16 if use_bf16 else jnp.float32

    # Zero-pad feature dims to lane multiples (inert padding), cast matmul
    # operands to the compute dtype.  Biases stay f32 (added to f32 acc).
    w1 = _pad2(params["w1"], IN_P, H1_P).astype(mm_dtype)
    b1 = _pad2(params["b1"], 1, H1_P)
    w2 = _pad2(params["w2"], H1_P, H2_P).astype(mm_dtype)
    b2 = _pad2(params["b2"], 1, H2_P)
    w3 = _pad2(params["w3"], H2_P, H3_P).astype(mm_dtype)
    b3 = _pad2(params["b3"], 1, H3_P)
    w4 = _pad2(params["w4"], H3_P, OUT_P).astype(mm_dtype)
    b4 = _pad2(params["b4"], 1, OUT_P)

    # Batch tile: multiple of 8 sublanes, clamped to the (padded) batch.
    TB = min(tb, _round_up(B, 8))
    TB = _round_up(TB, 8)
    B_pad = _round_up(B, TB)
    x_pad = _pad2(x, B_pad, IN_P).astype(mm_dtype)
    n_tiles = B_pad // TB

    # Constant index_map -> weights/biases resident in VMEM across grid steps.
    resident = lambda a: pl.BlockSpec(a.shape, lambda i: (0, 0))

    out_pad = pl.pallas_call(
        _mlp_kernel,
        out_shape=jax.ShapeDtypeStruct((B_pad, OUT_P), jnp.float32),
        grid=(n_tiles,),
        in_specs=[pl.BlockSpec((TB, IN_P), lambda i: (i, 0)),
                  resident(w1), resident(b1),
                  resident(w2), resident(b2),
                  resident(w3), resident(b3),
                  resident(w4), resident(b4)],
        out_specs=pl.BlockSpec((TB, OUT_P), lambda i: (i, 0)),
        compiler_params=pltpu.CompilerParams(
            dimension_semantics=("parallel",)),
    )(x_pad, w1, b1, w2, b2, w3, b3, w4, b4)

    return out_pad[:B, :100]


def init_params(key):
    """Mimics PyTorch Linear init U(-1/sqrt(fan_in), 1/sqrt(fan_in)); weights
    stored as (in, out) so the kernel computes x @ W (== x @ W_pt.T)."""
    dims = [(100, 250), (250, 512), (512, 250), (250, 100)]
    params = {}
    for i, (fan_in, fan_out) in enumerate(dims, start=1):
        key, kw, kb = jax.random.split(key, 3)
        bound = 1.0 / jnp.sqrt(fan_in)
        params[f"w{i}"] = jax.random.uniform(
            kw, (fan_in, fan_out), jnp.float32, minval=-bound, maxval=bound)
        params[f"b{i}"] = jax.random.uniform(
            kb, (1, fan_out), jnp.float32, minval=-bound, maxval=bound)
    return params


def reference_forward(x, params):
    h = jnp.maximum(x @ params["w1"] + params["b1"], 0.0)
    h = jnp.maximum(h @ params["w2"] + params["b2"], 0.0)
    h = jnp.maximum(h @ params["w3"] + params["b3"], 0.0)
    h = h @ params["w4"] + params["b4"]
    return jax.nn.sigmoid(h)


if __name__ == "__main__":
    key = jax.random.PRNGKey(0)
    key, kx = jax.random.split(key)
    B = 8
    x = jax.random.normal(kx, (B, 100), jnp.float32)
    params = init_params(key)

    # f32 path, single batch tile.
    ref = reference_forward(x, params)
    out = jax.block_until_ready(mlp_forward(x, params, tb=256, use_bf16=False))
    assert out.shape == (B, 100)
    assert jnp.allclose(out, ref, atol=2e-3, rtol=2e-3), \
        float(jnp.max(jnp.abs(out - ref)))

    # Multi-tile grid (batch padding + resident weights) with bf16 matmuls /
    # f32 accumulation.
    key, kx2 = jax.random.split(key)
    B2 = 200
    x2 = jax.random.normal(kx2, (B2, 100), jnp.float32)
    ref2 = reference_forward(x2, params)
    out2 = jax.block_until_ready(mlp_forward(x2, params, tb=64, use_bf16=True))
    assert out2.shape == (B2, 100)
    assert jnp.allclose(out2, ref2, atol=5e-2, rtol=5e-2), \
        float(jnp.max(jnp.abs(out2 - ref2)))

    print("KERNEL_OK")
</pallas_src>

<mosaic_0001>
module attributes {stable_mosaic.version = 11 : i64} {
  func.func @_mlp_kernel(%arg0: i32, %arg1: memref<8x128xf32, #tpu.memory_space<vmem>>, %arg2: memref<128x256xf32, #tpu.memory_space<vmem>>, %arg3: memref<1x256xf32, #tpu.memory_space<vmem>>, %arg4: memref<256x512xf32, #tpu.memory_space<vmem>>, %arg5: memref<1x512xf32, #tpu.memory_space<vmem>>, %arg6: memref<512x256xf32, #tpu.memory_space<vmem>>, %arg7: memref<1x256xf32, #tpu.memory_space<vmem>>, %arg8: memref<256x128xf32, #tpu.memory_space<vmem>>, %arg9: memref<1x128xf32, #tpu.memory_space<vmem>>, %arg10: memref<8x128xf32, #tpu.memory_space<vmem>>) attributes {dimension_semantics = [#tpu.dimension_semantics<parallel>], iteration_bounds = array<i64: 1>, scalar_prefetch = 0 : i64, scratch_operands = 0 : i64, tpu.core_type = #tpu.core_type<tc>, window_params = [{transform_indices = @transform_0, window_bounds = array<i64: 8, 128>}, {pipeline_mode = #tpu.pipeline_mode<synchronous>, transform_indices = @transform_1, window_bounds = array<i64: 128, 256>}, {pipeline_mode = #tpu.pipeline_mode<synchronous>, transform_indices = @transform_2, window_bounds = array<i64: 1, 256>}, {pipeline_mode = #tpu.pipeline_mode<synchronous>, transform_indices = @transform_3, window_bounds = array<i64: 256, 512>}, {pipeline_mode = #tpu.pipeline_mode<synchronous>, transform_indices = @transform_4, window_bounds = array<i64: 1, 512>}, {pipeline_mode = #tpu.pipeline_mode<synchronous>, transform_indices = @transform_5, window_bounds = array<i64: 512, 256>}, {pipeline_mode = #tpu.pipeline_mode<synchronous>, transform_indices = @transform_6, window_bounds = array<i64: 1, 256>}, {pipeline_mode = #tpu.pipeline_mode<synchronous>, transform_indices = @transform_7, window_bounds = array<i64: 256, 128>}, {pipeline_mode = #tpu.pipeline_mode<synchronous>, transform_indices = @transform_8, window_bounds = array<i64: 1, 128>}, {transform_indices = @transform_9, window_bounds = array<i64: 8, 128>}]} {
    %c0 = arith.constant 0 : index
    %c0_0 = arith.constant 0 : index
    %0 = vector.load %arg1[%c0, %c0_0] : memref<8x128xf32, #tpu.memory_space<vmem>>, vector<8x128xf32>
    %c0_1 = arith.constant 0 : index
    %c0_2 = arith.constant 0 : index
    %1 = vector.load %arg2[%c0_1, %c0_2] : memref<128x256xf32, #tpu.memory_space<vmem>>, vector<128x256xf32>
    %cst = arith.constant dense<0.000000e+00> : vector<8x256xf32>
    %2 = tpu.matmul %0, %1, %cst {dimension_numbers = #tpu.dot_dimension_numbers<[1], [0], [0], [1], [0, 0, 1, 1], [], []>} : vector<8x128xf32>, vector<128x256xf32>, vector<8x256xf32> -> vector<8x256xf32>
    %c0_3 = arith.constant 0 : index
    %c0_4 = arith.constant 0 : index
    %3 = vector.load %arg3[%c0_3, %c0_4] : memref<1x256xf32, #tpu.memory_space<vmem>>, vector<1x256xf32>
    %4 = vector.broadcast %3 : vector<1x256xf32> to vector<8x256xf32>
    %5 = arith.addf %2, %4 : vector<8x256xf32>
    %cst_5 = arith.constant 0.000000e+00 : f32
    %6 = vector.broadcast %cst_5 : f32 to vector<8x256xf32>
    %7 = arith.maximumf %5, %6 : vector<8x256xf32>
    %c0_6 = arith.constant 0 : index
    %c0_7 = arith.constant 0 : index
    %8 = vector.load %arg4[%c0_6, %c0_7] : memref<256x512xf32, #tpu.memory_space<vmem>>, vector<256x512xf32>
    %cst_8 = arith.constant dense<0.000000e+00> : vector<8x512xf32>
    %9 = tpu.matmul %7, %8, %cst_8 {dimension_numbers = #tpu.dot_dimension_numbers<[1], [0], [0], [1], [0, 0, 1, 1], [], []>} : vector<8x256xf32>, vector<256x512xf32>, vector<8x512xf32> -> vector<8x512xf32>
    %c0_9 = arith.constant 0 : index
    %c0_10 = arith.constant 0 : index
    %10 = vector.load %arg5[%c0_9, %c0_10] : memref<1x512xf32, #tpu.memory_space<vmem>>, vector<1x512xf32>
    %11 = vector.broadcast %10 : vector<1x512xf32> to vector<8x512xf32>
    %12 = arith.addf %9, %11 : vector<8x512xf32>
    %cst_11 = arith.constant 0.000000e+00 : f32
    %13 = vector.broadcast %cst_11 : f32 to vector<8x512xf32>
    %14 = arith.maximumf %12, %13 : vector<8x512xf32>
    %c0_12 = arith.constant 0 : index
    %c0_13 = arith.constant 0 : index
    %15 = vector.load %arg6[%c0_12, %c0_13] : memref<512x256xf32, #tpu.memory_space<vmem>>, vector<512x256xf32>
    %cst_14 = arith.constant dense<0.000000e+00> : vector<8x256xf32>
    %16 = tpu.matmul %14, %15, %cst_14 {dimension_numbers = #tpu.dot_dimension_numbers<[1], [0], [0], [1], [0, 0, 1, 1], [], []>} : vector<8x512xf32>, vector<512x256xf32>, vector<8x256xf32> -> vector<8x256xf32>
    %c0_15 = arith.constant 0 : index
    %c0_16 = arith.constant 0 : index
    %17 = vector.load %arg7[%c0_15, %c0_16] : memref<1x256xf32, #tpu.memory_space<vmem>>, vector<1x256xf32>
    %18 = vector.broadcast %17 : vector<1x256xf32> to vector<8x256xf32>
    %19 = arith.addf %16, %18 : vector<8x256xf32>
    %cst_17 = arith.constant 0.000000e+00 : f32
    %20 = vector.broadcast %cst_17 : f32 to vector<8x256xf32>
    %21 = arith.maximumf %19, %20 : vector<8x256xf32>
    %c0_18 = arith.constant 0 : index
    %c0_19 = arith.constant 0 : index
    %22 = vector.load %arg8[%c0_18, %c0_19] : memref<256x128xf32, #tpu.memory_space<vmem>>, vector<256x128xf32>
    %cst_20 = arith.constant dense<0.000000e+00> : vector<8x128xf32>
    %23 = tpu.matmul %21, %22, %cst_20 {dimension_numbers = #tpu.dot_dimension_numbers<[1], [0], [0], [1], [0, 0, 1, 1], [], []>} : vector<8x256xf32>, vector<256x128xf32>, vector<8x128xf32> -> vector<8x128xf32>
    %c0_21 = arith.constant 0 : index
    %c0_22 = arith.constant 0 : index
    %24 = vector.load %arg9[%c0_21, %c0_22] : memref<1x128xf32, #tpu.memory_space<vmem>>, vector<1x128xf32>
    %25 = vector.broadcast %24 : vector<1x128xf32> to vector<8x128xf32>
    %26 = arith.addf %23, %25 : vector<8x128xf32>
    %cst_23 = arith.constant 0.000000e+00 : f32
    %27 = vector.broadcast %cst_23 : f32 to vector<8x128xf32>
    %28 = arith.subf %27, %26 : vector<8x128xf32>
    %29 = math.exp %28 : vector<8x128xf32>
    %cst_24 = arith.constant 1.000000e+00 : f32
    %30 = vector.broadcast %cst_24 : f32 to vector<8x128xf32>
    %31 = arith.addf %30, %29 : vector<8x128xf32>
    %32 = tpu.reciprocal %31 {approx = true} : vector<8x128xf32> -> vector<8x128xf32>
    %c0_25 = arith.constant 0 : index
    %c0_26 = arith.constant 0 : index
    %33 = vector.load %arg10[%c0_25, %c0_26] : memref<8x128xf32, #tpu.memory_space<vmem>>, vector<8x128xf32>
    tpu.vector_store %arg10[%c0_25, %c0_26], %32 {strides = array<i32>} : memref<8x128xf32, #tpu.memory_space<vmem>>, vector<8x128xf32>,
    return
  }
  func.func @transform_0(%arg0: i32) -> (i32, i32) {
    %c0_i32 = arith.constant 0 : i32
    %c0_i32_0 = arith.constant 0 : i32
    return %arg0, %c0_i32 : i32, i32
  }
  func.func @transform_1(%arg0: i32) -> (i32, i32) {
    %c0_i32 = arith.constant 0 : i32
    %c0_i32_0 = arith.constant 0 : i32
    %c0_i32_1 = arith.constant 0 : i32
    return %c0_i32, %c0_i32_0 : i32, i32
  }
  func.func @transform_2(%arg0: i32) -> (i32, i32) {
    %c0_i32 = arith.constant 0 : i32
    %c0_i32_0 = arith.constant 0 : i32
    %c0_i32_1 = arith.constant 0 : i32
    return %c0_i32, %c0_i32_0 : i32, i32
  }
  func.func @transform_3(%arg0: i32) -> (i32, i32) {
    %c0_i32 = arith.constant 0 : i32
    %c0_i32_0 = arith.constant 0 : i32
    %c0_i32_1 = arith.constant 0 : i32
    return %c0_i32, %c0_i32_0 : i32, i32
  }
  func.func @transform_4(%arg0: i32) -> (i32, i32) {
    %c0_i32 = arith.constant 0 : i32
    %c0_i32_0 = arith.constant 0 : i32
    %c0_i32_1 = arith.constant 0 : i32
    return %c0_i32, %c0_i32_0 : i32, i32
  }
  func.func @transform_5(%arg0: i32) -> (i32, i32) {
    %c0_i32 = arith.constant 0 : i32
    %c0_i32_0 = arith.constant 0 : i32
    %c0_i32_1 = arith.constant 0 : i32
    return %c0_i32, %c0_i32_0 : i32, i32
  }
  func.func @transform_6(%arg0: i32) -> (i32, i32) {
    %c0_i32 = arith.constant 0 : i32
    %c0_i32_0 = arith.constant 0 : i32
    %c0_i32_1 = arith.constant 0 : i32
    return %c0_i32, %c0_i32_0 : i32, i32
  }
  func.func @transform_7(%arg0: i32) -> (i32, i32) {
    %c0_i32 = arith.constant 0 : i32
    %c0_i32_0 = arith.constant 0 : i32
    %c0_i32_1 = arith.constant 0 : i32
    return %c0_i32, %c0_i32_0 : i32, i32
  }
  func.func @transform_8(%arg0: i32) -> (i32, i32) {
    %c0_i32 = arith.constant 0 : i32
    %c0_i32_0 = arith.constant 0 : i32
    %c0_i32_1 = arith.constant 0 : i32
    return %c0_i32, %c0_i32_0 : i32, i32
  }
  func.func @transform_9(%arg0: i32) -> (i32, i32) {
    %c0_i32 = arith.constant 0 : i32
    %c0_i32_0 = arith.constant 0 : i32
    return %arg0, %c0_i32 : i32, i32
  }
}

</mosaic_0001>

<bundles_post_ra>
// kernel: mlp_forward.1
= control target key start
LH: loop header
LB: loop body
LE: loop exit
PB: predicated region body
PF: predicated region fallthrough
CT: control target
= control target key end

     0   :  { %v1250_v7 = vmov 0.0   ;;  %s2314_s0 = inlined_call_operand.vmem [shape: f32[8,128], index: 0, kind: input, shape index: {}]   ;;  %s2315_s1 = inlined_call_operand.vmem [shape: f32[128,256], index: 1, kind: input, shape index: {}]   ;;  %s2316_s2 = inlined_call_operand.vmem [shape: f32[1,256], index: 2, kind: input, shape index: {}]   ;;  %s2317_s3 = inlined_call_operand.vmem [shape: f32[256,512], index: 3, kind: input, shape index: {}]   ;;  %s2318_s4 = inlined_call_operand.vmem [shape: f32[1,512], index: 4, kind: input, shape index: {}]   ;;  %s2319_s5 = inlined_call_operand.vmem [shape: f32[512,256], index: 5, kind: input, shape index: {}]   ;;  %s2320_s6 = inlined_call_operand.vmem [shape: f32[1,256], index: 6, kind: input, shape index: {}]   ;;  %s2321_s7 = inlined_call_operand.vmem [shape: f32[256,128], index: 7, kind: input, shape index: {}]   ;;  %s2322_s8 = inlined_call_operand.vmem [shape: f32[1,128], index: 8, kind: input, shape index: {}]   ;;  %s2323_s9 = inlined_call_operand.hbm [shape: f32[8,128], index: 9, kind: output, shape index: {}]  }
   0x1   :  { %v35_v0 = vld [vmem:[%s2315_s1 + $0x8] sm:$0xff]  ;;  %v37_v1 = vld [vmem:[%s2315_s1 + $0x18] sm:$0xff]  ;;  %v34_v2 = vld [vmem:[%s2315_s1] sm:$0xff]  ;;  %142 = vmatprep.mubr.f32.mxu0 %v1250_v7 }
   0x2   :  { %v896_v3 = vpack.c.bf16 %v37_v1, %v35_v0  ;;  %v36_v4 = vld [vmem:[%s2315_s1 + $0x10] sm:$0xff]  ;;  %v39_v5 = vld [vmem:[%s2315_s1 + $0x28] sm:$0xff]  ;;  %v41_v6 = vld [vmem:[%s2315_s1 + $0x38] sm:$0xff] }
   0x3   :  { %v898_v8 = vpack.c.bf16 %v36_v4, %v34_v2  ;;  %v900_v9 = vpack.c.bf16 %v41_v6, %v39_v5  ;;  %v38_v10 = vld [vmem:[%s2315_s1 + $0x20] sm:$0xff]  ;;  %v40_v11 = vld [vmem:[%s2315_s1 + $0x30] sm:$0xff]  ;;  %v43_v12 = vld [vmem:[%s2315_s1 + $0x48] sm:$0xff] }
   0x4   :  { %897 = vmatprep.subr.bf16.mxu0 %v896_v3  ;;  %v45_v13 = vld [vmem:[%s2315_s1 + $0x58] sm:$0xff]  ;;  %v902_v14 = vpack.c.bf16 %v40_v11, %v38_v10  ;;  %v42_v16 = vld [vmem:[%s2315_s1 + $0x40] sm:$0xff]  ;;  %v44_v17 = vld [vmem:[%s2315_s1 + $0x50] sm:$0xff] }
   0x5   :  { %899 = vmatpush1.bf16.msra.mxu0 %v898_v8  ;;  %v904_v15 = vpack.c.bf16 %v45_v13, %v43_v12  ;;  %v47_v18 = vld [vmem:[%s2315_s1 + $0x68] sm:$0xff]  ;;  %v49_v19 = vld [vmem:[%s2315_s1 + $0x78] sm:$0xff]  ;;  %v906_v20 = vpack.c.bf16 %v44_v17, %v42_v16  ;;  %v46_v22 = vld [vmem:[%s2315_s1 + $0x60] sm:$0xff] }
   0x6   :  { %901 = vmatprep.subr.bf16.mxu0 %v900_v9  ;;  %v908_v21 = vpack.c.bf16 %v49_v19, %v47_v18  ;;  %v48_v23 = vld [vmem:[%s2315_s1 + $0x70] sm:$0xff]  ;;  %v51_v24 = vld [vmem:[%s2315_s1 + $0x88] sm:$0xff]  ;;  %v53_v25 = vld [vmem:[%s2315_s1 + $0x98] sm:$0xff] }
   0x7   :  { %v152_v26 = vld [vmem:[%s2317_s3 + $0x8] sm:$0xff]  ;;  %v910_v28 = vpack.c.bf16 %v48_v23, %v46_v22  ;;  %v151_v30 = vld [vmem:[%s2317_s3] sm:$0xff]  ;;  %v912_v32 = vpack.c.bf16 %v53_v25, %v51_v24  ;;  %v52_v34 = vld [vmem:[%s2315_s1 + $0x90] sm:$0xff] }
   0x8   :  { %v156_v27 = vld [vmem:[%s2317_s3 + $0x28] sm:$0xff]  ;;  %v155_v31 = vld [vmem:[%s2317_s3 + $0x20] sm:$0xff]  ;;  %v57_v38 = vld [vmem:[%s2315_s1 + $0xb8] sm:$0xff] }
   0x9   :  { %903 = vmatpush1.bf16.msra.mxu0 %v902_v14  ;;  %v928_v29 = vpack.c.bf16 %v156_v27, %v152_v26  ;;  %v50_v33 = vld [vmem:[%s2315_s1 + $0x80] sm:$0xff]  ;;  %v930_v35 = vpack.c.bf16 %v155_v31, %v151_v30  ;;  %v160_v36 = vld [vmem:[%s2317_s3 + $0x48] sm:$0xff]  ;;  %v56_v49 = vld [vmem:[%s2315_s1 + $0xb0] sm:$0xff] }
   0xa   :  { %905 = vmatprep.subr.bf16.mxu0 %v904_v15  ;;  %v55_v37 = vld [vmem:[%s2315_s1 + $0xa8] sm:$0xff]  ;;  %v159_v41 = vld [vmem:[%s2317_s3 + $0x40] sm:$0xff]  ;;  %v914_v43 = vpack.c.bf16 %v52_v34, %v50_v33  ;;  %v61_v53 = vld [vmem:[%s2315_s1 + $0xd8] sm:$0xff] }
   0xb   :  { %929 = vmatprep.subr.bf16.mxu1 %v928_v29  ;;  %v164_v39 = vld [vmem:[%s2317_s3 + $0x68] sm:$0xff]  ;;  %v163_v42 = vld [vmem:[%s2317_s3 + $0x60] sm:$0xff]  ;;  %v916_v47 = vpack.c.bf16 %v57_v38, %v55_v37  ;;  %v60_v0 = vld [vmem:[%s2315_s1 + $0xd0] sm:$0xff] }
   0xc   :  { %931 = vmatpush1.bf16.msra.mxu1 %v930_v35  ;;  %v932_v40 = vpack.c.bf16 %v164_v39, %v160_v36  ;;  %v934_v44 = vpack.c.bf16 %v163_v42, %v159_v41  ;;  %v168_v45 = vld [vmem:[%s2317_s3 + $0x88] sm:$0xff]  ;;  %v54_v48 = vld [vmem:[%s2315_s1 + $0xa0] sm:$0xff]  ;;  %v65_v3 = vld [vmem:[%s2315_s1 + $0xf8] sm:$0xff] }
   0xd   :  { %907 = vmatpush1.bf16.msra.mxu0 %v906_v20  ;;  %v172_v46 = vld [vmem:[%s2317_s3 + $0xa8] sm:$0xff]  ;;  %v167_v51 = vld [vmem:[%s2317_s3 + $0x80] sm:$0xff]  ;;  %v918_v58 = vpack.c.bf16 %v56_v49, %v54_v48  ;;  %v64_v12 = vld [vmem:[%s2315_s1 + $0xf0] sm:$0xff] }
   0xe   :  { %909 = vmatprep.subr.bf16.mxu0 %v908_v21  ;;  %933 = vmatprep.subr.bf16.mxu1 %v932_v40  ;;  %v936_v50 = vpack.c.bf16 %v172_v46, %v168_v45  ;;  %v59_v52 = vld [vmem:[%s2315_s1 + $0xc8] sm:$0xff]  ;;  %v171_v54 = vld [vmem:[%s2317_s3 + $0xa0] sm:$0xff]  ;;  %v154_v15 = vld [vmem:[%s2317_s3 + $0x18] sm:$0xff] }
   0xf   :  { %v938_v55 = vpack.c.bf16 %v171_v54, %v167_v51  ;;  %v176_v56 = vld [vmem:[%s2317_s3 + $0xc8] sm:$0xff]  ;;  %v175_v60 = vld [vmem:[%s2317_s3 + $0xc0] sm:$0xff]  ;;  %v920_v62 = vpack.c.bf16 %v61_v53, %v59_v52  ;;  %v158_v16 = vld [vmem:[%s2317_s3 + $0x38] sm:$0xff] }
  0x10   :  { %935 = vmatpush1.bf16.msra.mxu1 %v934_v44  ;;  %v180_v57 = vld [vmem:[%s2317_s3 + $0xe8] sm:$0xff]  ;;  %v179_v61 = vld [vmem:[%s2317_s3 + $0xe0] sm:$0xff]  ;;  %v153_v19 = vld [vmem:[%s2317_s3 + $0x10] sm:$0xff]  ;;  %v992_v23 = vpack.c.bf16 %v158_v16, %v154_v15 }
  0x11   :  { %911 = vmatpush1.bf16.msra.mxu0 %v910_v28  ;;  %937 = vmatprep.subr.bf16.mxu1 %v936_v50  ;;  %v940_v59 = vpack.c.bf16 %v180_v57, %v176_v56  ;;  %v58_v63 = vld [vmem:[%s2315_s1 + $0xc0] sm:$0xff]  ;;  %v184_v1 = vld [vmem:[%s2317_s3 + $0x108] sm:$0xff]  ;;  %v942_v5 = vpack.c.bf16 %v179_v61, %v175_v60  ;;  %v157_v24 = vld [vmem:[%s2317_s3 + $0x30] sm:$0xff] }
  0x12   :  { %913 = vmatprep.subr.bf16.mxu0 %v912_v32  ;;  %v63_v2 = vld [vmem:[%s2315_s1 + $0xe8] sm:$0xff]  ;;  %v922_v6 = vpack.c.bf16 %v60_v0, %v58_v63  ;;  %v62_v7 = vld [vmem:[%s2315_s1 + $0xe0] sm:$0xff]  ;;  %v162_v27 = vld [vmem:[%s2317_s3 + $0x58] sm:$0xff]  ;;  %v994_v31 = vpack.c.bf16 %v157_v24, %v153_v19 }
  0x13   :  { %v188_v4 = vld [vmem:[%s2317_s3 + $0x128] sm:$0xff]  ;;  %v183_v9 = vld [vmem:[%s2317_s3 + $0x100] sm:$0xff]  ;;  %v924_v11 = vpack.c.bf16 %v65_v3, %v63_v2  ;;  %v926_v18 = vpack.c.bf16 %v64_v12, %v62_v7  ;;  %v166_v28 = vld [vmem:[%s2317_s3 + $0x78] sm:$0xff] }
  0x14   :  { %939 = vmatpush1.bf16.msra.mxu1 %v938_v55  ;;  %v944_v8 = vpack.c.bf16 %v188_v4, %v184_v1  ;;  %v187_v10 = vld [vmem:[%s2317_s3 + $0x120] sm:$0xff]  ;;  %v192_v13 = vld [vmem:[%s2317_s3 + $0x148] sm:$0xff]  ;;  %v161_v32 = vld [vmem:[%s2317_s3 + $0x50] sm:$0xff]  ;;  %v996_v36 = vpack.c.bf16 %v166_v28, %v162_v27 }
  0x15   :  { %915 = vmatpush1.bf16.msra.mxu0 %v914_v43  ;;  %941 = vmatprep.subr.bf16.mxu1 %v940_v59  ;;  %v196_v14 = vld [vmem:[%s2317_s3 + $0x168] sm:$0xff]  ;;  %v946_v17 = vpack.c.bf16 %v187_v10, %v183_v9  ;;  %v191_v21 = vld [vmem:[%s2317_s3 + $0x140] sm:$0xff]  ;;  %v165_v37 = vld [vmem:[%s2317_s3 + $0x70] sm:$0xff] }
  0x16   :  { %917 = vmatprep.subr.bf16.mxu0 %v916_v47  ;;  %v948_v20 = vpack.c.bf16 %v196_v14, %v192_v13  ;;  %v195_v22 = vld [vmem:[%s2317_s3 + $0x160] sm:$0xff]  ;;  %v200_v25 = vld [vmem:[%s2317_s3 + $0x188] sm:$0xff]  ;;  %v170_v40 = vld [vmem:[%s2317_s3 + $0x98] sm:$0xff]  ;;  %v998_v43 = vpack.c.bf16 %v165_v37, %v161_v32 }
  0x17   :  { %v204_v26 = vld [vmem:[%s2317_s3 + $0x1a8] sm:$0xff]  ;;  %v33_v29 = vld [vmem:[%s2314_s0] sm:$0xff]  ;;  %v950_v30 = vpack.c.bf16 %v195_v22, %v191_v21  ;;  %v174_v41 = vld [vmem:[%s2317_s3 + $0xb8] sm:$0xff] }
  0x18   :  { %943 = vmatpush1.bf16.msra.mxu1 %v942_v5  ;;  %v952_v33 = vpack.c.bf16 %v204_v26, %v200_v25  ;;  %v199_v34 = vld [vmem:[%s2317_s3 + $0x180] sm:$0xff]  ;;  %v208_v38 = vld [vmem:[%s2317_s3 + $0x1c8] sm:$0xff]  ;;  %v169_v44 = vld [vmem:[%s2317_s3 + $0x90] sm:$0xff]  ;;  %v1000_v48 = vpack.c.bf16 %v174_v41, %v170_v40 }
  0x19   :  { %919 = vmatpush1.bf16.msra.mxu0 %v918_v58  ;;  %945 = vmatprep.subr.bf16.mxu1 %v944_v8  ;;  %v203_v35 = vld [vmem:[%s2317_s3 + $0x1a0] sm:$0xff]  ;;  %v212_v39 = vld [vmem:[%s2317_s3 + $0x1e8] sm:$0xff]  ;;  %v173_v49 = vld [vmem:[%s2317_s3 + $0xb0] sm:$0xff] }
  0x1a   :  { %921 = vmatprep.subr.bf16.mxu0 %v920_v62  ;;  %v954_v42 = vpack.c.bf16 %v203_v35, %v199_v34  ;;  %v956_v45 = vpack.c.bf16 %v212_v39, %v208_v38  ;;  %v207_v46 = vld [vmem:[%s2317_s3 + $0x1c0] sm:$0xff]  ;;  %v216_v50 = vld [vmem:[%s2317_s3 + $0x208] sm:$0xff]  ;;  %v178_v52 = vld [vmem:[%s2317_s3 + $0xd8] sm:$0xff]  ;;  %v1002_v55 = vpack.c.bf16 %v173_v49, %v169_v44 }
  0x1b   :  { %v211_v47 = vld [vmem:[%s2317_s3 + $0x1e0] sm:$0xff]  ;;  %v220_v51 = vld [vmem:[%s2317_s3 + $0x228] sm:$0xff]  ;;  %v182_v53 = vld [vmem:[%s2317_s3 + $0xf8] sm:$0xff] }
  0x1c   :  { %947 = vmatpush1.bf16.msra.mxu1 %v946_v17  ;;  %v958_v54 = vpack.c.bf16 %v211_v47, %v207_v46  ;;  %v177_v56 = vld [vmem:[%s2317_s3 + $0xd0] sm:$0xff]  ;;  %v960_v57 = vpack.c.bf16 %v220_v51, %v216_v50  ;;  %v215_v58 = vld [vmem:[%s2317_s3 + $0x200] sm:$0xff]  ;;  %v1004_v60 = vpack.c.bf16 %v182_v53, %v178_v52  ;;  %v224_v62 = vld [vmem:[%s2317_s3 + $0x248] sm:$0xff] }
  0x1d   :  { %923 = vmatpush1.bf16.msra.mxu0 %v922_v6  ;;  %949 = vmatprep.subr.bf16.mxu1 %v948_v20  ;;  %v219_v59 = vld [vmem:[%s2317_s3 + $0x220] sm:$0xff]  ;;  %v181_v61 = vld [vmem:[%s2317_s3 + $0xf0] sm:$0xff]  ;;  %v228_v63 = vld [vmem:[%s2317_s3 + $0x268] sm:$0xff] }
  0x1e   :  { %925 = vmatprep.subr.bf16.mxu0 %v924_v11  ;;  %v186_v0 = vld [vmem:[%s2317_s3 + $0x118] sm:$0xff]  ;;  %v962_v2 = vpack.c.bf16 %v219_v59, %v215_v58  ;;  %v1006_v3 = vpack.c.bf16 %v181_v61, %v177_v56  ;;  %v185_v4 = vld [vmem:[%s2317_s3 + $0x110] sm:$0xff]  ;;  %v964_v5 = vpack.c.bf16 %v228_v63, %v224_v62  ;;  %v223_v6 = vld [vmem:[%s2317_s3 + $0x240] sm:$0xff] }
  0x1f   :  { %v190_v1 = vld [vmem:[%s2317_s3 + $0x138] sm:$0xff]  ;;  %v227_v7 = vld [vmem:[%s2317_s3 + $0x260] sm:$0xff]  ;;  %v189_v9 = vld [vmem:[%s2317_s3 + $0x130] sm:$0xff] }
  0x20   :  { %951 = vmatpush1.bf16.msra.mxu1 %v950_v30  ;;  %v1008_v8 = vpack.c.bf16 %v190_v1, %v186_v0  ;;  %v232_v10 = vld [vmem:[%s2317_s3 + $0x288] sm:$0xff]  ;;  %v194_v12 = vld [vmem:[%s2317_s3 + $0x158] sm:$0xff]  ;;  %v966_v14 = vpack.c.bf16 %v227_v7, %v223_v6  ;;  %v1010_v15 = vpack.c.bf16 %v189_v9, %v185_v4  ;;  %v193_v16 = vld [vmem:[%s2317_s3 + $0x150] sm:$0xff] }
  0x21   :  { %927 = vmatpush1.bf16.msra.mxu0 %v926_v18  ;;  %953 = vmatprep.subr.bf16.mxu1 %v952_v33  ;;  %v236_v11 = vld [vmem:[%s2317_s3 + $0x2a8] sm:$0xff]  ;;  %v198_v13 = vld [vmem:[%s2317_s3 + $0x178] sm:$0xff]  ;;  %v231_v18 = vld [vmem:[%s2317_s3 + $0x280] sm:$0xff] }
  0x22   :  { %993 = vmatprep.subr.bf16.mxu0 %v992_v23  ;;  %v968_v17 = vpack.c.bf16 %v236_v11, %v232_v10  ;;  %v235_v19 = vld [vmem:[%s2317_s3 + $0x2a0] sm:$0xff]  ;;  %v1012_v20 = vpack.c.bf16 %v198_v13, %v194_v12  ;;  %v197_v21 = vld [vmem:[%s2317_s3 + $0x170] sm:$0xff]  ;;  %v240_v22 = vld [vmem:[%s2317_s3 + $0x2c8] sm:$0xff] }
  0x23   :  { %v244_v23 = vld [vmem:[%s2317_s3 + $0x2e8] sm:$0xff]  ;;  %v202_v24 = vld [vmem:[%s2317_s3 + $0x198] sm:$0xff] }
  0x24   :  { %143 = vmatmul.mubr.f32.vlgmr.msra.gmra.mrb[0].mxu0 %v33_v29  ;;  %955 = vmatpush1.bf16.msra.mxu1 %v954_v42  ;;  %v206_v25 = vld [vmem:[%s2317_s3 + $0x1b8] sm:$0xff] }
  0x25   :  { %995 = vmatpush1.bf16.msra.mxu0 %v994_v31  ;;  %957 = vmatprep.subr.bf16.mxu1 %v956_v45 }
  0x26   :  { %997 = vmatprep.subr.bf16.mxu0 %v996_v36 }
  0x28   :  { %959 = vmatpush1.bf16.msra.mxu1 %v958_v54 }
  0x29   :  { %999 = vmatpush1.bf16.msra.mxu0 %v998_v43  ;;  %961 = vmatprep.subr.bf16.mxu1 %v960_v57 }
  0x2a   :  { %1001 = vmatprep.subr.bf16.mxu0 %v1000_v48 }
  0x2c   :  { %963 = vmatpush1.bf16.msra.mxu1 %v962_v2 }
  0x2d   :  { %1003 = vmatpush1.bf16.msra.mxu0 %v1002_v55  ;;  %965 = vmatprep.subr.bf16.mxu1 %v964_v5 }
  0x2e   :  { %1005 = vmatprep.subr.bf16.mxu0 %v1004_v60 }
  0x31   :  { %1007 = vmatpush1.bf16.msra.mxu0 %v1006_v3 }
  0x32   :  { %1009 = vmatprep.subr.bf16.mxu0 %v1008_v8 }
  0x33   :  { %14 = vsyncpa [#allocation3], 0  ;;  %967 = vmatpush1.bf16.msra.mxu1 %v966_v14  ;;  %v970_v26 = vpack.c.bf16 %v235_v19, %v231_v18  ;;  %v1014_v27 = vpack.c.bf16 %v197_v21, %v193_v16  ;;  %v201_v28 = vld [vmem:[%s2317_s3 + $0x190] sm:$0xff]  ;;  %v972_v29 = vpack.c.bf16 %v244_v23, %v240_v22  ;;  %v239_v30 = vld [vmem:[%s2317_s3 + $0x2c0] sm:$0xff]  ;;  %v1016_v32 = vpack.c.bf16 %v206_v25, %v202_v24 }
  0x34   :  { %969 = vmatprep.subr.bf16.mxu1 %v968_v17  ;;  %v243_v31 = vld [vmem:[%s2317_s3 + $0x2e0] sm:$0xff]  ;;  %v205_v33 = vld [vmem:[%s2317_s3 + $0x1b0] sm:$0xff]  ;;  %v248_v34 = vld [vmem:[%s2317_s3 + $0x308] sm:$0xff] }
  0x35   :  { %1011 = vmatpush1.bf16.msra.mxu0 %v1010_v15  ;;  %v252_v35 = vld [vmem:[%s2317_s3 + $0x328] sm:$0xff]  ;;  %v210_v36 = vld [vmem:[%s2317_s3 + $0x1d8] sm:$0xff]  ;;  %v974_v38 = vpack.c.bf16 %v243_v31, %v239_v30  ;;  %v1018_v39 = vpack.c.bf16 %v205_v33, %v201_v28  ;;  %v209_v40 = vld [vmem:[%s2317_s3 + $0x1d0] sm:$0xff] }
  0x36   :  { %1013 = vmatprep.subr.bf16.mxu0 %v1012_v20  ;;  %v214_v37 = vld [vmem:[%s2317_s3 + $0x1f8] sm:$0xff]  ;;  %v976_v41 = vpack.c.bf16 %v252_v35, %v248_v34  ;;  %v247_v42 = vld [vmem:[%s2317_s3 + $0x300] sm:$0xff]  ;;  %v213_v45 = vld [vmem:[%s2317_s3 + $0x1f0] sm:$0xff] }
  0x37   :  { %971 = vmatpush1.bf16.msra.mxu1 %v970_v26  ;;  %v251_v43 = vld [vmem:[%s2317_s3 + $0x320] sm:$0xff]  ;;  %v1020_v44 = vpack.c.bf16 %v214_v37, %v210_v36  ;;  %v256_v46 = vld [vmem:[%s2317_s3 + $0x348] sm:$0xff]  ;;  %v218_v48 = vld [vmem:[%s2317_s3 + $0x218] sm:$0xff]  ;;  %v1022_v51 = vpack.c.bf16 %v213_v45, %v209_v40 }
  0x38   :  { %973 = vmatprep.subr.bf16.mxu1 %v972_v29  ;;  %v260_v47 = vld [vmem:[%s2317_s3 + $0x368] sm:$0xff]  ;;  %v222_v49 = vld [vmem:[%s2317_s3 + $0x238] sm:$0xff]  ;;  %v978_v50 = vpack.c.bf16 %v251_v43, %v247_v42  ;;  %v217_v52 = vld [vmem:[%s2317_s3 + $0x210] sm:$0xff] }
  0x39   :  { %1015 = vmatpush1.bf16.msra.mxu0 %v1014_v27  ;;  %v980_v53 = vpack.c.bf16 %v260_v47, %v256_v46  ;;  %v255_v54 = vld [vmem:[%s2317_s3 + $0x340] sm:$0xff]  ;;  %v1024_v56 = vpack.c.bf16 %v222_v49, %v218_v48  ;;  %v221_v57 = vld [vmem:[%s2317_s3 + $0x230] sm:$0xff]  ;;  %v264_v58 = vld [vmem:[%s2317_s3 + $0x388] sm:$0xff] }
  0x3a   :  { %1017 = vmatprep.subr.bf16.mxu0 %v1016_v32  ;;  %v259_v55 = vld [vmem:[%s2317_s3 + $0x360] sm:$0xff]  ;;  %v268_v59 = vld [vmem:[%s2317_s3 + $0x3a8] sm:$0xff]  ;;  %v226_v60 = vld [vmem:[%s2317_s3 + $0x258] sm:$0xff]  ;;  %v1026_v63 = vpack.c.bf16 %v221_v57, %v217_v52 }
  0x3b   :  { %975 = vmatpush1.bf16.msra.mxu1 %v974_v38  ;;  %v230_v61 = vld [vmem:[%s2317_s3 + $0x278] sm:$0xff]  ;;  %v982_v62 = vpack.c.bf16 %v259_v55, %v255_v54  ;;  %v984_v0 = vpack.c.bf16 %v268_v59, %v264_v58  ;;  %v225_v2 = vld [vmem:[%s2317_s3 + $0x250] sm:$0xff]  ;;  %v263_v32 = vld [vmem:[%s2317_s3 + $0x380] sm:$0xff] }
  0x3c   :  { %977 = vmatprep.subr.bf16.mxu1 %v976_v41  ;;  %v1028_v1 = vpack.c.bf16 %v230_v61, %v226_v60  ;;  %v229_v3 = vld [vmem:[%s2317_s3 + $0x270] sm:$0xff]  ;;  %v234_v4 = vld [vmem:[%s2317_s3 + $0x298] sm:$0xff]  ;;  %v267_v33 = vld [vmem:[%s2317_s3 + $0x3a0] sm:$0xff] }
  0x3d   :  { %1019 = vmatpush1.bf16.msra.mxu0 %v1018_v39  ;;  %v238_v5 = vld [vmem:[%s2317_s3 + $0x2b8] sm:$0xff]  ;;  %v1030_v6 = vpack.c.bf16 %v229_v3, %v225_v2  ;;  %v233_v8 = vld [vmem:[%s2317_s3 + $0x290] sm:$0xff]  ;;  %v986_v35 = vpack.c.bf16 %v267_v33, %v263_v32  ;;  %v272_v38 = vld [vmem:[%s2317_s3 + $0x3c8] sm:$0xff] }
  0x3e   :  { %1021 = vmatprep.subr.bf16.mxu0 %v1020_v44  ;;  %v1032_v7 = vpack.c.bf16 %v238_v5, %v234_v4  ;;  %v237_v9 = vld [vmem:[%s2317_s3 + $0x2b0] sm:$0xff]  ;;  %v242_v10 = vld [vmem:[%s2317_s3 + $0x2d8] sm:$0xff]  ;;  %v276_v39 = vld [vmem:[%s2317_s3 + $0x3e8] sm:$0xff] }
  0x3f   :  { %979 = vmatpush1.bf16.msra.mxu1 %v978_v50  ;;  %v246_v11 = vld [vmem:[%s2317_s3 + $0x2f8] sm:$0xff]  ;;  %v1034_v12 = vpack.c.bf16 %v237_v9, %v233_v8  ;;  %v241_v14 = vld [vmem:[%s2317_s3 + $0x2d0] sm:$0xff]  ;;  %v988_v41 = vpack.c.bf16 %v276_v39, %v272_v38  ;;  %v271_v43 = vld [vmem:[%s2317_s3 + $0x3c0] sm:$0xff] }
  0x40   :  { %981 = vmatprep.subr.bf16.mxu1 %v980_v53  ;;  %v1036_v13 = vpack.c.bf16 %v246_v11, %v242_v10  ;;  %v245_v15 = vld [vmem:[%s2317_s3 + $0x2f0] sm:$0xff]  ;;  %v250_v16 = vld [vmem:[%s2317_s3 + $0x318] sm:$0xff]  ;;  %v275_v44 = vld [vmem:[%s2317_s3 + $0x3e0] sm:$0xff]  ;;  %v68_v53 = vlaneseq }
  0x41   :  { %1023 = vmatpush1.bf16.msra.mxu0 %v1022_v51  ;;  %v254_v17 = vld [vmem:[%s2317_s3 + $0x338] sm:$0xff]  ;;  %v1038_v18 = vpack.c.bf16 %v245_v15, %v241_v14  ;;  %v249_v20 = vld [vmem:[%s2317_s3 + $0x310] sm:$0xff]  ;;  %v990_v46 = vpack.c.bf16 %v275_v44, %v271_v43  ;;  %v448_v50 = vld [vmem:[%s2319_s5 + $0x8] sm:$0xff] }
  0x42   :  { %1025 = vmatprep.subr.bf16.mxu0 %v1024_v56  ;;  %v1040_v19 = vpack.c.bf16 %v254_v17, %v250_v16  ;;  %v253_v21 = vld [vmem:[%s2317_s3 + $0x330] sm:$0xff]  ;;  %v258_v22 = vld [vmem:[%s2317_s3 + $0x358] sm:$0xff]  ;;  %v1791_v54 = vshrl.u32 %v68_v53, 7  ;;  %v66_v56 = vld [vmem:[%s2316_s2] sm:$0x3] }
  0x43   :  { %983 = vmatpush1.bf16.msra.mxu1 %v982_v62  ;;  %v262_v23 = vld [vmem:[%s2317_s3 + $0x378] sm:$0xff]  ;;  %v1042_v24 = vpack.c.bf16 %v253_v21, %v249_v20  ;;  %v257_v26 = vld [vmem:[%s2317_s3 + $0x350] sm:$0xff]  ;;  %v452_v2 = vld [vmem:[%s2319_s5 + $0x28] sm:$0xff] }
  0x44   :  { %985 = vmatprep.subr.bf16.mxu1 %v984_v0  ;;  %v1044_v25 = vpack.c.bf16 %v262_v23, %v258_v22  ;;  %v261_v27 = vld [vmem:[%s2317_s3 + $0x370] sm:$0xff]  ;;  %v266_v28 = vld [vmem:[%s2317_s3 + $0x398] sm:$0xff]  ;;  %v1794_v55 = vsub.s32 0, %v1791_v54  ;;  %v1800_v57 = vsub.s32 1, %v1791_v54  ;;  %v451_v8 = vld [vmem:[%s2319_s5 + $0x20] sm:$0xff] }
  0x45   :  { %1027 = vmatpush1.bf16.msra.mxu0 %v1026_v63  ;;  %v270_v29 = vld [vmem:[%s2317_s3 + $0x3b8] sm:$0xff]  ;;  %v1046_v30 = vpack.c.bf16 %v261_v27, %v257_v26  ;;  %v265_v34 = vld [vmem:[%s2317_s3 + $0x390] sm:$0xff]  ;;  %v447_v63 = vld [vmem:[%s2319_s5] sm:$0xff] }
  0x46   :  { %1029 = vmatprep.subr.bf16.mxu0 %v1028_v1  ;;  %v1048_v31 = vpack.c.bf16 %v270_v29, %v266_v28  ;;  %v269_v36 = vld [vmem:[%s2317_s3 + $0x3b0] sm:$0xff]  ;;  %v274_v40 = vld [vmem:[%s2317_s3 + $0x3d8] sm:$0xff]  ;;  %v71_v58 = vrot.slane %v66_v56, %v1794_v55  ;;  %v75_v59 = vrot.slane %v66_v56, %v1800_v57  ;;  %v456_v10 = vld [vmem:[%s2319_s5 + $0x48] sm:$0xff] }
  0x47   :  { %v1050_v37 = vpack.c.bf16 %v269_v36, %v265_v34  ;;  %987 = vmatpush1.bf16.msra.mxu1 %v986_v35  ;;  %v278_v42 = vld [vmem:[%s2317_s3 + $0x3f8] sm:$0xff]  ;;  %v273_v47 = vld [vmem:[%s2317_s3 + $0x3d0] sm:$0xff]  ;;  %v455_v14 = vld [vmem:[%s2319_s5 + $0x40] sm:$0xff] }
  0x48   :  { %v1052_v45 = vpack.c.bf16 %v278_v42, %v274_v40  ;;  %v277_v48 = vld [vmem:[%s2317_s3 + $0x3f0] sm:$0xff]  ;;  %989 = vmatprep.subr.bf16.mxu1 %v988_v41  ;;  %v450_v51 = vld [vmem:[%s2319_s5 + $0x18] sm:$0xff]  ;;  %v460_v16 = vld [vmem:[%s2319_s5 + $0x68] sm:$0xff] }
  0x49   :  { %1031 = vmatpush1.bf16.msra.mxu0 %v1030_v6  ;;  %v1054_v49 = vpack.c.bf16 %v277_v48, %v273_v47  ;;  %v1056_v52 = vpack.c.bf16 %v450_v51, %v448_v50  ;;  %v449_v0 = vld [vmem:[%s2319_s5 + $0x10] sm:$0xff]  ;;  %v454_v3 = vld [vmem:[%s2319_s5 + $0x38] sm:$0xff]  ;;  %v459_v20 = vld [vmem:[%s2319_s5 + $0x60] sm:$0xff] }
  0x4a   :  { %1033 = vmatprep.subr.bf16.mxu0 %v1032_v7  ;;  %v1058_v5 = vpack.c.bf16 %v449_v0, %v447_v63  ;;  %v1060_v7 = vpack.c.bf16 %v454_v3, %v452_v2  ;;  %v453_v9 = vld [vmem:[%s2319_s5 + $0x30] sm:$0xff]  ;;  %v458_v11 = vld [vmem:[%s2319_s5 + $0x58] sm:$0xff]  ;;  %v464_v22 = vld [vmem:[%s2319_s5 + $0x88] sm:$0xff] }
  0x4b   :  { %991 = vmatpush1.bf16.msra.mxu1 %v990_v46  ;;  %v457_v15 = vld [vmem:[%s2319_s5 + $0x50] sm:$0xff]  ;;  %v462_v17 = vld [vmem:[%s2319_s5 + $0x78] sm:$0xff]  ;;  %v463_v26 = vld [vmem:[%s2319_s5 + $0x80] sm:$0xff] }
  0x4c   :  { %1057 = vmatprep.subr.bf16.mxu1 %v1056_v52  ;;  %v461_v21 = vld [vmem:[%s2319_s5 + $0x70] sm:$0xff]  ;;  %v466_v23 = vld [vmem:[%s2319_s5 + $0x98] sm:$0xff]  ;;  %v468_v28 = vld [vmem:[%s2319_s5 + $0xa8] sm:$0xff] }
  0x4d   :  { %1035 = vmatpush1.bf16.msra.mxu0 %v1034_v12  ;;  %v1062_v12 = vpack.c.bf16 %v453_v9, %v451_v8  ;;  %v465_v27 = vld [vmem:[%s2319_s5 + $0x90] sm:$0xff]  ;;  %v470_v29 = vld [vmem:[%s2319_s5 + $0xb8] sm:$0xff]  ;;  %v467_v32 = vld [vmem:[%s2319_s5 + $0xa0] sm:$0xff] }
  0x4e   :  { %1037 = vmatprep.subr.bf16.mxu0 %v1036_v13  ;;  %v1064_v13 = vpack.c.bf16 %v458_v11, %v456_v10  ;;  %v469_v33 = vld [vmem:[%s2319_s5 + $0xb0] sm:$0xff]  ;;  %v472_v34 = vld [vmem:[%s2319_s5 + $0xc8] sm:$0xff]  ;;  %v474_v35 = vld [vmem:[%s2319_s5 + $0xd8] sm:$0xff] }
  0x4f   :  { %v1078_v36 = vpack.c.bf16 %v469_v33, %v467_v32  ;;  %v471_v38 = vld [vmem:[%s2319_s5 + $0xc0] sm:$0xff]  ;;  %v473_v39 = vld [vmem:[%s2319_s5 + $0xd0] sm:$0xff]  ;;  %v476_v40 = vld [vmem:[%s2319_s5 + $0xe8] sm:$0xff] }
  0x50   :  { %v478_v41 = vld [vmem:[%s2319_s5 + $0xf8] sm:$0xff]  ;;  %v1082_v42 = vpack.c.bf16 %v473_v39, %v471_v38  ;;  %v475_v44 = vld [vmem:[%s2319_s5 + $0xe0] sm:$0xff]  ;;  %v480_v46 = vld [vmem:[%s2319_s5 + $0x108] sm:$0xff] }
  0x51   :  { %1039 = vmatpush1.bf16.msra.mxu0 %v1038_v18  ;;  %v1066_v18 = vpack.c.bf16 %v457_v15, %v455_v14  ;;  %v1084_v43 = vpack.c.bf16 %v478_v41, %v476_v40  ;;  %v482_v47 = vld [vmem:[%s2319_s5 + $0x118] sm:$0xff]  ;;  %v479_v50 = vld [vmem:[%s2319_s5 + $0x100] sm:$0xff]  ;;  %v481_v51 = vld [vmem:[%s2319_s5 + $0x110] sm:$0xff] }
  0x52   :  { %1041 = vmatprep.subr.bf16.mxu0 %v1040_v19  ;;  %v1068_v19 = vpack.c.bf16 %v462_v17, %v460_v16  ;;  %v484_v52 = vld [vmem:[%s2319_s5 + $0x128] sm:$0xff]  ;;  %v486_v53 = vld [vmem:[%s2319_s5 + $0x138] sm:$0xff]  ;;  %v1090_v56 = vpack.c.bf16 %v481_v51, %v479_v50  ;;  %v489_v2 = vld [vmem:[%s2319_s5 + $0x150] sm:$0xff] }
  0x53   :  { %v492_v3 = vld [vmem:[%s2319_s5 + $0x168] sm:$0xff]  ;;  %v493_v8 = vld [vmem:[%s2319_s5 + $0x170] sm:$0xff]  ;;  %v498_v10 = vld [vmem:[%s2319_s5 + $0x198] sm:$0xff] }
  0x54   :  { %v496_v9 = vld [vmem:[%s2319_s5 + $0x188] sm:$0xff]  ;;  %v497_v14 = vld [vmem:[%s2319_s5 + $0x190] sm:$0xff]  ;;  %v502_v16 = vld [vmem:[%s2319_s5 + $0x1b8] sm:$0xff] }
  0x55   :  { %1043 = vmatpush1.bf16.msra.mxu0 %v1042_v24  ;;  %v1070_v24 = vpack.c.bf16 %v461_v21, %v459_v20  ;;  %v500_v15 = vld [vmem:[%s2319_s5 + $0x1a8] sm:$0xff]  ;;  %v501_v20 = vld [vmem:[%s2319_s5 + $0x1b0] sm:$0xff]  ;;  %v731_v39 = vld [vmem:[%s2321_s7] sm:$0xff] }
  0x56   :  { %1045 = vmatprep.subr.bf16.mxu0 %v1044_v25  ;;  %v1072_v25 = vpack.c.bf16 %v466_v23, %v464_v22  ;;  %v504_v21 = vld [vmem:[%s2319_s5 + $0x1c8] sm:$0xff]  ;;  %v506_v22 = vld [vmem:[%s2319_s5 + $0x1d8] sm:$0xff]  ;;  %v509_v32 = vld [vmem:[%s2319_s5 + $0x1f0] sm:$0xff] }
  0x57   :  { %v748_v38 = vld [vmem:[%s2321_s7 + $0x88] sm:$0xff] }
  0x58   :  { %v732_v41 = vld [vmem:[%s2321_s7 + $0x8] sm:$0xff] }
  0x59   :  { %1047 = vmatpush1.bf16.msra.mxu0 %v1046_v30  ;;  %v1074_v30 = vpack.c.bf16 %v465_v27, %v463_v26  ;;  %v505_v26 = vld [vmem:[%s2319_s5 + $0x1d0] sm:$0xff] }
  0x5a   :  { %1049 = vmatprep.subr.bf16.mxu0 %v1048_v31  ;;  %v1076_v31 = vpack.c.bf16 %v470_v29, %v468_v28  ;;  %v508_v28 = vld [vmem:[%s2319_s5 + $0x1e8] sm:$0xff]  ;;  %v510_v29 = vld [vmem:[%s2319_s5 + $0x1f8] sm:$0xff] }
  0x5d   :  { %1051 = vmatpush1.bf16.msra.mxu0 %v1050_v37  ;;  %v1080_v37 = vpack.c.bf16 %v474_v35, %v472_v34  ;;  %v512_v34 = vld [vmem:[%s2319_s5 + $0x208] sm:$0xff]  ;;  %v514_v35 = vld [vmem:[%s2319_s5 + $0x218] sm:$0xff] }
  0x5e   :  { %1053 = vmatprep.subr.bf16.mxu0 %v1052_v45  ;;  %v477_v45 = vld [vmem:[%s2319_s5 + $0xf0] sm:$0xff] }
  0x5f   :  { %v1086_v48 = vpack.c.bf16 %v477_v45, %v475_v44  ;;  %v1186_v44 = vpack.c.bf16 %v732_v41, %v731_v39  ;;  %v522_v39 = vld [vmem:[%s2319_s5 + $0x258] sm:$0xff] }
  0x61   :  { %1055 = vmatpush1.bf16.msra.mxu0 %v1054_v49  ;;  %v1088_v49 = vpack.c.bf16 %v482_v47, %v480_v46  ;;  %v733_v46 = vld [vmem:[%s2321_s7 + $0x10] sm:$0xff]  ;;  %v734_v47 = vld [vmem:[%s2321_s7 + $0x18] sm:$0xff] }
  0x62   :  { %v1190_v50 = vpack.c.bf16 %v734_v47, %v733_v46 }
  0xf7   :  { %v144_v60 = vpop.f32.mrb[0].mxu0 }
  0xf8   :  { %v145_v61 = vadd.f32 %v144_v60, %v71_v58  ;;  %v146_v62 = vpop.f32.mrb[1].mxu0  ;;  %v1092_v58 = vpack.c.bf16 %v486_v53, %v484_v52  ;;  %v485_v60 = vld [vmem:[%s2319_s5 + $0x130] sm:$0xff]  ;;  %v735_v52 = vld [vmem:[%s2321_s7 + $0x20] sm:$0xff]  ;;  %v736_v53 = vld [vmem:[%s2321_s7 + $0x28] sm:$0xff] }
  0xf9   :  { %v147_v1 = vadd.f32 %v146_v62, %v75_v59  ;;  %v483_v59 = vld [vmem:[%s2319_s5 + $0x120] sm:$0xff]  ;;  %v490_v62 = vld [vmem:[%s2319_s5 + $0x158] sm:$0xff] }
  0xfa   :  { %v149_v6 = vmax.f32 %v145_v61, 0.0  ;;  %v488_v61 = vld [vmem:[%s2319_s5 + $0x148] sm:$0xff]  ;;  %v1094_v63 = vpack.c.bf16 %v485_v60, %v483_v59  ;;  %v1194_v59 = vpack.c.bf16 %v736_v53, %v735_v52 }
  0xfb   :  { %v150_v4 = vmax.f32 %v147_v1, 0.0  ;;  %v1096_v0 = vpack.c.bf16 %v490_v62, %v488_v61  ;;  %v487_v1 = vld [vmem:[%s2319_s5 + $0x140] sm:$0xff]  ;;  %v737_v61 = vld [vmem:[%s2321_s7 + $0x30] sm:$0xff]  ;;  %v738_v62 = vld [vmem:[%s2321_s7 + $0x38] sm:$0xff] }
  0xfd   :  { %365 = vmatprep.mubr.f32.mxu1 %v150_v4  ;;  %436 = vmatprep.mubr.f32.mxu0 %v150_v4  ;;  %v494_v4 = vld [vmem:[%s2319_s5 + $0x178] sm:$0xff] }
  0xfe   :  { %366 = vmatmul.mubr.f32.vlgmr.msra.gmra.mrb[0].mxu1 %v149_v6  ;;  %437 = vmatmul.mubr.f32.vlgmr.msra.gmra.mrb[2].mxu0 %v149_v6  ;;  %v1100_v6 = vpack.c.bf16 %v494_v4, %v492_v3  ;;  %v739_v3 = vld [vmem:[%s2321_s7 + $0x40] sm:$0xff]  ;;  %v740_v4 = vld [vmem:[%s2321_s7 + $0x48] sm:$0xff] }
  0xff   :  { %1059 = vmatpush1.bf16.msra.mxu1 %v1058_v5  ;;  %v1098_v5 = vpack.c.bf16 %v489_v2, %v487_v1  ;;  %v1198_v1 = vpack.c.bf16 %v738_v62, %v737_v61 }
 0x100   :  { %1061 = vmatprep.subr.bf16.mxu1 %v1060_v7  ;;  %v491_v7 = vld [vmem:[%s2319_s5 + $0x160] sm:$0xff] }
 0x101   :  { %v1102_v11 = vpack.c.bf16 %v493_v8, %v491_v7  ;;  %v1202_v7 = vpack.c.bf16 %v740_v4, %v739_v3 }
 0x103   :  { %1063 = vmatpush1.bf16.msra.mxu1 %v1062_v12  ;;  %v1104_v12 = vpack.c.bf16 %v498_v10, %v496_v9  ;;  %v741_v9 = vld [vmem:[%s2321_s7 + $0x50] sm:$0xff]  ;;  %v742_v10 = vld [vmem:[%s2321_s7 + $0x58] sm:$0xff] }
 0x104   :  { %1065 = vmatprep.subr.bf16.mxu1 %v1064_v13  ;;  %v495_v13 = vld [vmem:[%s2319_s5 + $0x180] sm:$0xff] }
 0x105   :  { %v1106_v17 = vpack.c.bf16 %v497_v14, %v495_v13  ;;  %v1206_v13 = vpack.c.bf16 %v742_v10, %v741_v9 }
 0x107   :  { %1067 = vmatpush1.bf16.msra.mxu1 %v1066_v18  ;;  %v1108_v18 = vpack.c.bf16 %v502_v16, %v500_v15  ;;  %v2077_v15 = vld [vmem:[%s2318_s4] sm:$0xf]  ;;  %v295_v16 = vsub.s32 3, %v1791_v54 }
 0x108   :  { %1069 = vmatprep.subr.bf16.mxu1 %v1068_v19  ;;  %v499_v19 = vld [vmem:[%s2319_s5 + $0x1a0] sm:$0xff] }
 0x109   :  { %v1110_v23 = vpack.c.bf16 %v501_v20, %v499_v19  ;;  %v296_v19 = vrot.slane %v2077_v15, %v295_v16 }
 0x10b   :  { %1071 = vmatpush1.bf16.msra.mxu1 %v1070_v24  ;;  %v1112_v24 = vpack.c.bf16 %v506_v22, %v504_v21 }
 0x10c   :  { %1073 = vmatprep.subr.bf16.mxu1 %v1072_v25  ;;  %v503_v25 = vld [vmem:[%s2319_s5 + $0x1c0] sm:$0xff] }
 0x10d   :  { %v1114_v27 = vpack.c.bf16 %v505_v26, %v503_v25  ;;  %v511_v25 = vld [vmem:[%s2319_s5 + $0x200] sm:$0xff]  ;;  %v513_v26 = vld [vmem:[%s2319_s5 + $0x210] sm:$0xff] }
 0x10f   :  { %1075 = vmatpush1.bf16.msra.mxu1 %v1074_v30  ;;  %v1116_v30 = vpack.c.bf16 %v510_v29, %v508_v28  ;;  %v516_v29 = vld [vmem:[%s2319_s5 + $0x228] sm:$0xff] }
 0x110   :  { %1077 = vmatprep.subr.bf16.mxu1 %v1076_v31  ;;  %v507_v31 = vld [vmem:[%s2319_s5 + $0x1e0] sm:$0xff] }
 0x111   :  { %v1118_v33 = vpack.c.bf16 %v509_v32, %v507_v31  ;;  %v1122_v32 = vpack.c.bf16 %v513_v26, %v511_v25  ;;  %v547_v25 = vld [vmem:[%s2319_s5 + $0x320] sm:$0xff]  ;;  %v549_v26 = vld [vmem:[%s2319_s5 + $0x330] sm:$0xff] }
 0x113   :  { %1079 = vmatpush1.bf16.msra.mxu1 %v1078_v36  ;;  %v1120_v36 = vpack.c.bf16 %v514_v35, %v512_v34  ;;  %v515_v35 = vld [vmem:[%s2319_s5 + $0x220] sm:$0xff] }
 0x114   :  { %1081 = vmatprep.subr.bf16.mxu1 %v1080_v37  ;;  %v747_v37 = vld [vmem:[%s2321_s7 + $0x80] sm:$0xff] }
 0x115   :  { %v1184_v40 = vpack.c.bf16 %v748_v38, %v747_v37  ;;  %v520_v38 = vld [vmem:[%s2319_s5 + $0x248] sm:$0xff] }
 0x116   :  { %v1128_v41 = vpack.c.bf16 %v522_v39, %v520_v38  ;;  %v557_v38 = vld [vmem:[%s2319_s5 + $0x370] sm:$0xff]  ;;  %v560_v39 = vld [vmem:[%s2319_s5 + $0x388] sm:$0xff] }
 0x117   :  { %1083 = vmatpush1.bf16.msra.mxu1 %v1082_v42  ;;  %v749_v42 = vld [vmem:[%s2321_s7 + $0x90] sm:$0xff]  ;;  %1185 = vmatprep.subr.bf16.mxu0 %v1184_v40 }
 0x118   :  { %1085 = vmatprep.subr.bf16.mxu1 %v1084_v43  ;;  %v750_v43 = vld [vmem:[%s2321_s7 + $0x98] sm:$0xff]  ;;  %1187 = vmatpush3.bf16.msra.mxu0 %v1186_v44  ;;  %v524_v44 = vld [vmem:[%s2319_s5 + $0x268] sm:$0xff] }
 0x119   :  { %v1188_v45 = vpack.c.bf16 %v750_v43, %v749_v42  ;;  %v519_v42 = vld [vmem:[%s2319_s5 + $0x240] sm:$0xff]  ;;  %v521_v43 = vld [vmem:[%s2319_s5 + $0x250] sm:$0xff] }
 0x11a   :  { %v1130_v46 = vpack.c.bf16 %v521_v43, %v519_v42  ;;  %v559_v43 = vld [vmem:[%s2319_s5 + $0x380] sm:$0xff] }
 0x11b   :  { %1087 = vmatpush1.bf16.msra.mxu1 %v1086_v48  ;;  %v751_v48 = vld [vmem:[%s2321_s7 + $0xa0] sm:$0xff]  ;;  %1189 = vmatprep.subr.bf16.mxu0 %v1188_v45  ;;  %v526_v45 = vld [vmem:[%s2319_s5 + $0x278] sm:$0xff] }
 0x11c   :  { %1089 = vmatprep.subr.bf16.mxu1 %v1088_v49  ;;  %v752_v49 = vld [vmem:[%s2321_s7 + $0xa8] sm:$0xff]  ;;  %1191 = vmatpush3.bf16.msra.mxu0 %v1190_v50  ;;  %v1132_v47 = vpack.c.bf16 %v526_v45, %v524_v44  ;;  %v561_v44 = vld [vmem:[%s2319_s5 + $0x390] sm:$0xff] }
 0x11d   :  { %v1192_v51 = vpack.c.bf16 %v752_v49, %v751_v48  ;;  %v523_v48 = vld [vmem:[%s2319_s5 + $0x260] sm:$0xff]  ;;  %v525_v49 = vld [vmem:[%s2319_s5 + $0x270] sm:$0xff]  ;;  %v528_v50 = vld [vmem:[%s2319_s5 + $0x288] sm:$0xff] }
 0x11e   :  { %v1134_v52 = vpack.c.bf16 %v525_v49, %v523_v48  ;;  %v564_v45 = vld [vmem:[%s2319_s5 + $0x3a8] sm:$0xff]  ;;  %v563_v49 = vld [vmem:[%s2319_s5 + $0x3a0] sm:$0xff] }
 0x11f   :  { %1091 = vmatpush1.bf16.msra.mxu1 %v1090_v56  ;;  %v753_v56 = vld [vmem:[%s2321_s7 + $0xb0] sm:$0xff]  ;;  %1193 = vmatprep.subr.bf16.mxu0 %v1192_v51  ;;  %v530_v51 = vld [vmem:[%s2319_s5 + $0x298] sm:$0xff] }
 0x120   :  { %1093 = vmatprep.subr.bf16.mxu1 %v1092_v58  ;;  %v754_v58 = vld [vmem:[%s2321_s7 + $0xb8] sm:$0xff]  ;;  %1195 = vmatpush3.bf16.msra.mxu0 %v1194_v59  ;;  %v1136_v53 = vpack.c.bf16 %v530_v51, %v528_v50  ;;  %v532_v59 = vld [vmem:[%s2319_s5 + $0x2a8] sm:$0xff]  ;;  %v565_v50 = vld [vmem:[%s2319_s5 + $0x3b0] sm:$0xff] }
 0x121   :  { %v1196_v60 = vpack.c.bf16 %v754_v58, %v753_v56  ;;  %v527_v56 = vld [vmem:[%s2319_s5 + $0x280] sm:$0xff]  ;;  %v529_v58 = vld [vmem:[%s2319_s5 + $0x290] sm:$0xff]  ;;  %v568_v51 = vld [vmem:[%s2319_s5 + $0x3c8] sm:$0xff] }
 0x122   :  { %v1138_v61 = vpack.c.bf16 %v529_v58, %v527_v56  ;;  %v291_v56 = vsub.s32 2, %v1791_v54 }
 0x123   :  { %1095 = vmatpush1.bf16.msra.mxu1 %v1094_v63  ;;  %v755_v63 = vld [vmem:[%s2321_s7 + $0xc0] sm:$0xff]  ;;  %1197 = vmatprep.subr.bf16.mxu0 %v1196_v60  ;;  %v534_v60 = vld [vmem:[%s2319_s5 + $0x2b8] sm:$0xff] }
 0x124   :  { %1097 = vmatprep.subr.bf16.mxu1 %v1096_v0  ;;  %v756_v0 = vld [vmem:[%s2321_s7 + $0xc8] sm:$0xff]  ;;  %1199 = vmatpush3.bf16.msra.mxu0 %v1198_v1  ;;  %v1140_v62 = vpack.c.bf16 %v534_v60, %v532_v59  ;;  %v567_v59 = vld [vmem:[%s2319_s5 + $0x3c0] sm:$0xff]  ;;  %v569_v60 = vld [vmem:[%s2319_s5 + $0x3d0] sm:$0xff] }
 0x125   :  { %v1200_v2 = vpack.c.bf16 %v756_v0, %v755_v63  ;;  %v531_v63 = vld [vmem:[%s2319_s5 + $0x2a0] sm:$0xff]  ;;  %v533_v0 = vld [vmem:[%s2319_s5 + $0x2b0] sm:$0xff]  ;;  %v536_v1 = vld [vmem:[%s2319_s5 + $0x2c8] sm:$0xff]  ;;  %v1178_v54 = vpack.c.bf16 %v569_v60, %v567_v59 }
 0x126   :  { %v1142_v3 = vpack.c.bf16 %v533_v0, %v531_v63  ;;  %v292_v63 = vrot.slane %v2077_v15, %v291_v56 }
 0x127   :  { %1099 = vmatpush1.bf16.msra.mxu1 %v1098_v5  ;;  %v757_v5 = vld [vmem:[%s2321_s7 + $0xd0] sm:$0xff]  ;;  %1201 = vmatprep.subr.bf16.mxu0 %v1200_v2  ;;  %v538_v2 = vld [vmem:[%s2319_s5 + $0x2d8] sm:$0xff] }
 0x128   :  { %1101 = vmatprep.subr.bf16.mxu1 %v1100_v6  ;;  %v758_v6 = vld [vmem:[%s2321_s7 + $0xd8] sm:$0xff]  ;;  %1203 = vmatpush3.bf16.msra.mxu0 %v1202_v7  ;;  %v1144_v4 = vpack.c.bf16 %v538_v2, %v536_v1  ;;  %v540_v7 = vld [vmem:[%s2319_s5 + $0x2e8] sm:$0xff]  ;;  %v571_v1 = vld [vmem:[%s2319_s5 + $0x3e0] sm:$0xff] }
 0x129   :  { %v1204_v8 = vpack.c.bf16 %v758_v6, %v757_v5  ;;  %v535_v5 = vld [vmem:[%s2319_s5 + $0x2c0] sm:$0xff]  ;;  %v537_v6 = vld [vmem:[%s2319_s5 + $0x2d0] sm:$0xff] }
 0x12a   :  { %v1146_v9 = vpack.c.bf16 %v537_v6, %v535_v5  ;;  %v573_v2 = vld [vmem:[%s2319_s5 + $0x3f0] sm:$0xff]  ;;  %v744_v6 = vld [vmem:[%s2321_s7 + $0x68] sm:$0xff] }
 0x12b   :  { %1103 = vmatpush1.bf16.msra.mxu1 %v1102_v11  ;;  %v759_v11 = vld [vmem:[%s2321_s7 + $0xe0] sm:$0xff]  ;;  %1205 = vmatprep.subr.bf16.mxu0 %v1204_v8  ;;  %v542_v8 = vld [vmem:[%s2319_s5 + $0x2f8] sm:$0xff] }
 0x12c   :  { %1105 = vmatprep.subr.bf16.mxu1 %v1104_v12  ;;  %v760_v12 = vld [vmem:[%s2321_s7 + $0xe8] sm:$0xff]  ;;  %1207 = vmatpush3.bf16.msra.mxu0 %v1206_v13  ;;  %v1148_v10 = vpack.c.bf16 %v542_v8, %v540_v7  ;;  %v761_v8 = vld [vmem:[%s2321_s7 + $0xf0] sm:$0xff] }
 0x12d   :  { %v1208_v14 = vpack.c.bf16 %v760_v12, %v759_v11  ;;  %v539_v11 = vld [vmem:[%s2319_s5 + $0x2e0] sm:$0xff]  ;;  %v541_v12 = vld [vmem:[%s2319_s5 + $0x2f0] sm:$0xff]  ;;  %v544_v13 = vld [vmem:[%s2319_s5 + $0x308] sm:$0xff] }
 0x12e   :  { %v1150_v16 = vpack.c.bf16 %v541_v12, %v539_v11  ;;  %v746_v11 = vld [vmem:[%s2321_s7 + $0x78] sm:$0xff] }
 0x12f   :  { %1107 = vmatpush1.bf16.msra.mxu1 %v1106_v17  ;;  %1209 = vmatprep.subr.bf16.mxu0 %v1208_v14  ;;  %v284_v17 = vrot.slane %v2077_v15, %v1794_v55  ;;  %v546_v14 = vld [vmem:[%s2319_s5 + $0x318] sm:$0xff] }
 0x130   :  { %1109 = vmatprep.subr.bf16.mxu1 %v1108_v18  ;;  %v288_v18 = vrot.slane %v2077_v15, %v1800_v57  ;;  %v743_v15 = vld [vmem:[%s2321_s7 + $0x60] sm:$0xff] }
 0x131   :  { %v1210_v7 = vpack.c.bf16 %v744_v6, %v743_v15 }
 0x133   :  { %1111 = vmatpush1.bf16.msra.mxu1 %v1110_v23  ;;  %1211 = vmatpush3.bf16.msra.mxu0 %v1210_v7 }
 0x134   :  { %1113 = vmatprep.subr.bf16.mxu1 %v1112_v24 }
 0x137   :  { %1115 = vmatpush1.bf16.msra.mxu1 %v1114_v27 }
 0x138   :  { %1117 = vmatprep.subr.bf16.mxu1 %v1116_v30  ;;  %v518_v30 = vld [vmem:[%s2319_s5 + $0x238] sm:$0xff] }
 0x139   :  { %v1124_v34 = vpack.c.bf16 %v518_v30, %v516_v29  ;;  %v1158_v29 = vpack.c.bf16 %v549_v26, %v547_v25  ;;  %v860_v25 = vld [vmem:[%s2322_s8] ss:$0 sm:$0xff] }
 0x13b   :  { %1119 = vmatpush1.bf16.msra.mxu1 %v1118_v33 }
 0x13c   :  { %1121 = vmatprep.subr.bf16.mxu1 %v1120_v36  ;;  %v517_v36 = vld [vmem:[%s2319_s5 + $0x230] sm:$0xff] }
 0x13d   :  { %v1126_v40 = vpack.c.bf16 %v517_v36, %v515_v35 }
 0x1d1   :  { %v367_v20 = vpop.f32.mrb[0].mxu1  ;;  %v2085_v21 = vpop.f32.mrb[2].mxu0 }
 0x1d2   :  { %v368_v22 = vadd.f32 %v367_v20, %v284_v17  ;;  %v369_v23 = vpop.f32.mrb[1].mxu1  ;;  %v440_v24 = vpop.f32.mrb[3].mxu0  ;;  %v1152_v17 = vpack.c.bf16 %v546_v14, %v544_v13  ;;  %v548_v20 = vld [vmem:[%s2319_s5 + $0x328] sm:$0xff]  ;;  %v575_v13 = vld [vmem:[%s2320_s6] sm:$0x3]  ;;  %s1251_s6 = smov [#allocation2]  }
 0x1d3   :  { %v370_v27 = vadd.f32 %v369_v23, %v288_v18  ;;  %v441_v28 = vadd.f32 %v440_v24, %v296_v19  ;;  %v543_v18 = vld [vmem:[%s2319_s5 + $0x300] sm:$0xff]  ;;  %v545_v19 = vld [vmem:[%s2319_s5 + $0x310] sm:$0xff]  ;;  %v580_v14 = vrot.slane %v575_v13, %v1794_v55  ;;  %s852_s15 = sshll.u32 %s1251_s6, 4  ;;  %s853_s15 = int_to_ptr.vmem [resolvable:$true] %s852_s15 }
 0x1d4   :  { %v443_v33 = vmax.f32 %v368_v22, 0.0  ;;  %v550_v22 = vld [vmem:[%s2319_s5 + $0x338] sm:$0xff]  ;;  %v1154_v23 = vpack.c.bf16 %v545_v19, %v543_v18  ;;  %s1226_s1 = scalar_lea.vmem %s853_s15, 128  ;;  %p1231_p1 = scmp.lt.s32.totalorder %s853_s15, %s853_s15 }
 0x1d5   :  { %v444_v31 = vmax.f32 %v370_v27, 0.0  ;;  %v446_v37 = vmax.f32 %v441_v28, 0.0  ;;  %v1156_v24 = vpack.c.bf16 %v550_v22, %v548_v20  ;;  %v552_v27 = vld [vmem:[%s2319_s5 + $0x348] sm:$0xff]  ;;  %v554_v28 = vld [vmem:[%s2319_s5 + $0x358] sm:$0xff]  ;;  %p1227_p0 = scmp.ne.s32.totalorder %s853_s15, %s1226_s1  ;;  %p1232_p2 = scmp.lt.s32.totalorder %s1226_s1, %s1226_s1 }
 0x1d6   :  { %v1160_v30 = vpack.c.bf16 %v554_v28, %v552_v27 }
 0x1d7   :  { %651 = vmatprep.mubr.f32.mxu1 %v444_v31  ;;  %v551_v31 = vld [vmem:[%s2319_s5 + $0x340] sm:$0xff]  ;;  %p1233_p3 = por %p1232_p2, %p1231_p1 }
 0x1d8   :  { %652 = vmatmul.mubr.f32.vlgmr.msra.gmra.mrb[2].mxu1 %v443_v33  ;;  %v556_v33 = vld [vmem:[%s2319_s5 + $0x368] sm:$0xff] }
 0x1d9   :  { %1123 = vmatpush1.bf16.msra.mxu1 %v1122_v32  ;;  %722 = vmatprep.mubr.f32.mxu1 %v446_v37  ;;  %v553_v32 = vld [vmem:[%s2319_s5 + $0x350] sm:$0xff]  ;;  %v555_v37 = vld [vmem:[%s2319_s5 + $0x360] sm:$0xff]  ;;  %p1234_p4 = pnand %p1233_p3, %p1227_p0 }
 0x1da   :  { %1125 = vmatprep.subr.bf16.mxu1 %v1124_v34  ;;  %v558_v34 = vld [vmem:[%s2319_s5 + $0x378] sm:$0xff]  ;;  %v1162_v35 = vpack.c.bf16 %v553_v32, %v551_v31 }
 0x1db   :  { %v1164_v36 = vpack.c.bf16 %v558_v34, %v556_v33 }
 0x1dd   :  { %1127 = vmatpush1.bf16.msra.mxu1 %v1126_v40  ;;  %v562_v40 = vld [vmem:[%s2319_s5 + $0x398] sm:$0xff] }
 0x1de   :  { %1129 = vmatprep.subr.bf16.mxu1 %v1128_v41  ;;  %v1166_v41 = vpack.c.bf16 %v557_v38, %v555_v37  ;;  %v1168_v42 = vpack.c.bf16 %v562_v40, %v560_v39 }
 0x1e1   :  { %1131 = vmatpush1.bf16.msra.mxu1 %v1130_v46  ;;  %v566_v46 = vld [vmem:[%s2319_s5 + $0x3b8] sm:$0xff] }
 0x1e2   :  { %1133 = vmatprep.subr.bf16.mxu1 %v1132_v47  ;;  %v1170_v47 = vpack.c.bf16 %v561_v44, %v559_v43  ;;  %v1172_v48 = vpack.c.bf16 %v566_v46, %v564_v45 }
 0x1e5   :  { %1135 = vmatpush1.bf16.msra.mxu1 %v1134_v52  ;;  %v570_v52 = vld [vmem:[%s2319_s5 + $0x3d8] sm:$0xff] }
 0x1e6   :  { %1137 = vmatprep.subr.bf16.mxu1 %v1136_v53  ;;  %v1174_v53 = vpack.c.bf16 %v565_v50, %v563_v49  ;;  %v1176_v58 = vpack.c.bf16 %v570_v52, %v568_v51 }
 0x1e9   :  { %1139 = vmatpush1.bf16.msra.mxu1 %v1138_v61  ;;  %v572_v61 = vld [vmem:[%s2319_s5 + $0x3e8] sm:$0xff] }
 0x1ea   :  { %1141 = vmatprep.subr.bf16.mxu1 %v1140_v62  ;;  %v574_v62 = vld [vmem:[%s2319_s5 + $0x3f8] sm:$0xff] }
 0x1eb   :  { %v1180_v0 = vpack.c.bf16 %v574_v62, %v572_v61 }
 0x1ed   :  { %1143 = vmatpush1.bf16.msra.mxu1 %v1142_v3  ;;  %v1182_v3 = vpack.c.bf16 %v573_v2, %v571_v1 }
 0x1ee   :  { %1145 = vmatprep.subr.bf16.mxu1 %v1144_v4  ;;  %v439_v4 = vadd.f32 %v2085_v21, %v292_v63  ;;  %v762_v21 = vld [vmem:[%s2321_s7 + $0xf8] sm:$0xff] }
 0x1f0   :  { %v445_v5 = vmax.f32 %v439_v4, 0.0 }
 0x1f1   :  { %1147 = vmatpush1.bf16.msra.mxu1 %v1146_v9  ;;  %v1212_v9 = vpack.c.bf16 %v762_v21, %v761_v8 }
 0x1f2   :  { %1149 = vmatprep.subr.bf16.mxu1 %v1148_v10  ;;  %v745_v10 = vld [vmem:[%s2321_s7 + $0x70] sm:$0xff] }
 0x1f3   :  { %v1214_v12 = vpack.c.bf16 %v746_v11, %v745_v10  ;;  %1213 = vmatprep.subr.bf16.mxu0 %v1212_v9 }
 0x1f5   :  { %1151 = vmatpush1.bf16.msra.mxu1 %v1150_v16  ;;  %1215 = vmatpush3.bf16.msra.mxu0 %v1214_v12  ;;  %v584_v16 = vrot.slane %v575_v13, %v1800_v57 }
 0x1f6   :  { %1153 = vmatprep.subr.bf16.mxu1 %v1152_v17 }
 0x1f9   :  { %1155 = vmatpush1.bf16.msra.mxu1 %v1154_v23 }
 0x1fa   :  { %1157 = vmatprep.subr.bf16.mxu1 %v1156_v24 }
 0x1fd   :  { %1159 = vmatpush1.bf16.msra.mxu1 %v1158_v29 }
 0x1fe   :  { %1161 = vmatprep.subr.bf16.mxu1 %v1160_v30 }
 0x201   :  { %1163 = vmatpush1.bf16.msra.mxu1 %v1162_v35 }
 0x202   :  { %1165 = vmatprep.subr.bf16.mxu1 %v1164_v36 }
 0x205   :  { %1167 = vmatpush1.bf16.msra.mxu1 %v1166_v41 }
 0x206   :  { %1169 = vmatprep.subr.bf16.mxu1 %v1168_v42 }
 0x209   :  { %1171 = vmatpush1.bf16.msra.mxu1 %v1170_v47 }
 0x20a   :  { %1173 = vmatprep.subr.bf16.mxu1 %v1172_v48 }
 0x20d   :  { %1175 = vmatpush1.bf16.msra.mxu1 %v1174_v53 }
 0x20e   :  { %1177 = vmatprep.subr.bf16.mxu1 %v1176_v58 }
 0x211   :  { %1179 = vmatpush1.bf16.msra.mxu1 %v1178_v54 }
 0x212   :  { %1181 = vmatprep.subr.bf16.mxu1 %v1180_v0 }
 0x215   :  { %1183 = vmatpush1.bf16.msra.mxu1 %v1182_v3 }
 0x218   :  { %723 = vmatmul.mubr.f32.vlgmr.msra.gmra.mrb[2].mxu1 %v445_v5 }
 0x2eb   :  { %v724_v17 = vpop.f32.mrb[2].mxu1 }
 0x2ec   :  { %v1216_v18 = vadd.f32 %v724_v17, %v580_v14  ;;  %v726_v19 = vpop.f32.mrb[3].mxu1 }
 0x2ed   :  { %v1217_v20 = vadd.f32 %v726_v19, %v584_v16 }
 0x2ee   :  { %v729_v23 = vmax.f32 %v1216_v18, 0.0 }
 0x2ef   :  { %v730_v22 = vmax.f32 %v1217_v20, 0.0 }
 0x2f1   :  { %834 = vmatprep.mubr.f32.mxu0 %v730_v22 }
 0x2f2   :  { %835 = vmatmul.mubr.f32.vlgmr.msra.gmra.mrb[4].mxu0 %v729_v23 }
 0x3c5   :  { %v893_v24 = vpop.f32.mrb[4].mxu0 }
 0x3c6   :  { %v894_v26 = vpop.f32.mrb[5].mxu0 }
 0x3c7   :  { %v895_v27 = vadd.f32 %v894_v26, %v893_v24 }
 0x3c9   :  { %v837_v28 = vadd.f32 %v895_v27, %v860_v25 }
 0x3cb   :  { %v840_v29 = vsub.f32 0.0, %v837_v28 }
 0x3cd   :  { %v841_v55 = vmul.f32 1.442695, %v840_v29 }
 0x3cf   :  { %1222 = vpow2.f32 %v841_v55 }
 0x3d9   :  { %v1223_v57 = vpop.eup %1222 }
 0x3da   :  { %v843_v30 = vadd.f32 1.0, %v1223_v57 }
 0x3dc   :  { %1224 = vrcp.f32 %v843_v30 }
 0x3e6   :  { %v1225_v31 = vpop.eup %1224 }
 0x3e7   :  { %845 = vst [vmem:[#allocation2] sm:$0xff] %v1225_v31 }
 0x3e8   :  { %1237 = shalt.err (!%p1234_p4)
}
 0x3e9   :  { %s1238_s0 = scalar_lea.hbm %s2323_s9, 128 }
 0x3ea   :  { %p1239_p5 = scmp.ne.s32.totalorder %s2323_s9, %s1238_s0  ;;  %p1242_p6 = scmp.lt.u32.totalorder %s1238_s0, %s2323_s9 }
 0x3ec   :  { %p1244_p7 = pnand %p1242_p6, %p1239_p5 }
 0x3ee   :  { %1247 = shalt.err (!%p1244_p7)
}
 0x3ef   :  { %855 = dma.vmem_to_hbm [thread:$0]  %s853_s15, 128, %s2323_s9, [#allocation3]  }
 0x3f0   :  { %1248 = dma.done.wait [#allocation3], 128  }
 0x3f1   :  { %1249 = vsyncadd [#allocation3], 4294967168 }
 0x3f2   :  { %859 = vsyncpa [#allocation3], 1 }

</bundles_post_ra>
